<compile_context>
chip_gen: v7x
topology: tpu7x:2x2x1
jax: 0.10.0
libtpu: 0.0.40
codegen_flags: <defaults>
</compile_context>

<pallas_src>
import jax
import jax.numpy as jnp
from jax import lax
from jax.experimental import pallas as pl
from jax.experimental.pallas import tpu as pltpu

# --- small, module-consistent shapes ---------------------------------------
BATCH = 2
SEQ = 40           # input length; SEQ // 4 == linear_in as the module requires
CHANNELS = 8       # torch default is 25; small synthetic value
LINEAR_IN = 10
OUT_SIZE = 16

K1, S1, P1 = 5, 2, 2
K2, S2, P2 = 3, 2, 1
K3, S3, P3 = 3, 1, 1

L1 = (SEQ + 2 * P1 - K1) // S1 + 1       # 20
L2 = (L1 + 2 * P2 - K2) // S2 + 1        # 10
L3 = (L2 + 2 * P3 - K3) // S3 + 1        # 10
assert L3 == LINEAR_IN, "module requires linear_in == SEQ // 4"

BB = 8                                   # batch block (8 sublane rows per grid step)
NPAD = 128                               # lane-dense output / linear width
XLEN = SEQ + 2 * P1                      # 44 padded-input taps
XCOLS = ((XLEN + 7) // 8) * 8            # 48 (8-aligned)
D1 = L1 * CHANNELS                       # 160 lanes of h1 (pos*C + ch)
D2 = L2 * CHANNELS                       # 80  lanes of h2
D3 = L3 * CHANNELS                       # 80  lanes of h3
PCOLS = max(D1, D2, D3, NPAD)            # 160 packed-param lane width


def _align8(n):
    return ((n + 7) // 8) * 8


# --- packed-parameter row offsets: every block starts on an 8-row boundary --
R_W1 = 0                                 # (XCOLS, D1)  banded conv1
R_W2 = R_W1 + _align8(XCOLS)             # (D1, D2)     banded conv2
R_W3 = R_W2 + _align8(D1)                # (D2, D3)     banded conv3
R_WL = R_W3 + _align8(D2)                # (D3, NPAD)   linear (lane-dense)
R_B1 = R_WL + _align8(D3)                # (1, D1)
R_B2 = R_B1 + 8                          # (1, D2)
R_B3 = R_B2 + 8                          # (1, D3)
R_BL = R_B3 + 8                          # (1, NPAD)
ROWS = R_BL + 8


def convbase_kernel(x_ref, p_ref, out_ref):
    """Four chained MXU matmuls; conv structure lives in the banded weights."""
    x = x_ref[...]                                        # (BB, XCOLS)

    w1 = p_ref[R_W1:R_W1 + XCOLS, 0:D1]                   # aligned zero-cost views
    w2 = p_ref[R_W2:R_W2 + D1, 0:D2]
    w3 = p_ref[R_W3:R_W3 + D2, 0:D3]
    wl = p_ref[R_WL:R_WL + D3, 0:NPAD]
    b1 = p_ref[R_B1:R_B1 + 1, 0:D1]
    b2 = p_ref[R_B2:R_B2 + 1, 0:D2]
    b3 = p_ref[R_B3:R_B3 + 1, 0:D3]
    bl = p_ref[R_BL:R_BL + 1, 0:NPAD]

    h1 = jnp.maximum(jnp.dot(x, w1, preferred_element_type=jnp.float32) + b1, 0.0)
    h2 = jnp.maximum(jnp.dot(h1, w2, preferred_element_type=jnp.float32) + b2, 0.0)
    h3 = jnp.maximum(jnp.dot(h2, w3, preferred_element_type=jnp.float32) + b3, 0.0)
    out_ref[...] = jnp.dot(h3, wl, preferred_element_type=jnp.float32) + bl


def _build_packed_params(params):
    """Fold conv taps/stride/padding into banded weight matrices and pack all
    weights/biases into a single 8-row-aligned, lane-padded operand.
    Pure parameter preprocessing (zero FLOPs on activations); in production it
    would be done once at model-load time."""
    (w1, b1, w2, b2, w3, b3, wl, bl) = params
    C = CHANNELS
    f32 = jnp.float32

    # conv1: W1[2p+k, p*C+co] = w1[co, 0, k]
    oh1 = (jnp.arange(XCOLS)[:, None, None] ==
           (S1 * jnp.arange(L1)[None, :, None] +
            jnp.arange(K1)[None, None, :])).astype(f32)          # (XCOLS, L1, K1)
    W1 = jnp.einsum('tpk,ok->tpo', oh1, w1[:, 0, :]).reshape(XCOLS, D1)

    # conv2: W2[(2l+k-1)*C+ci, l*C+co] = w2[co, ci, k]; out-of-range rows -> 0 (padding)
    pos2 = S2 * jnp.arange(L2)[None, :] + jnp.arange(K2)[:, None] - P2   # (K2, L2)
    oh2 = (jnp.arange(L1)[:, None, None] == pos2[None, :, :]).astype(f32)  # (L1, K2, L2)
    W2 = jnp.einsum('pkl,oik->pilo', oh2, w2).reshape(D1, D2)

    # conv3: W3[(l+k-1)*C+ci, l*C+co] = w3[co, ci, k]
    pos3 = S3 * jnp.arange(L3)[None, :] + jnp.arange(K3)[:, None] - P3
    oh3 = (jnp.arange(L2)[:, None, None] == pos3[None, :, :]).astype(f32)
    W3 = jnp.einsum('pkl,oik->pilo', oh3, w3).reshape(D2, D3)

    # linear: torch flatten of (B, C, L3) is c*L3+l; our h3 lanes are l*C+c.
    WL = jnp.transpose(wl.reshape(OUT_SIZE, C, L3), (2, 1, 0)).reshape(D3, OUT_SIZE)
    WL = jnp.pad(WL, ((0, 0), (0, NPAD - OUT_SIZE)))             # lane-dense (128)

    B1 = jnp.tile(b1, L1)[None, :]                               # (1, D1)
    B2 = jnp.tile(b2, L2)[None, :]
    B3 = jnp.tile(b3, L3)[None, :]
    BL = jnp.pad(bl, (0, NPAD - OUT_SIZE))[None, :]

    def blk(a, rows):
        return jnp.pad(a.astype(f32),
                       ((0, rows - a.shape[0]), (0, PCOLS - a.shape[1])))

    packed = jnp.concatenate(
        [blk(W1, R_W2 - R_W1), blk(W2, R_W3 - R_W2), blk(W3, R_WL - R_W3),
         blk(WL, R_B1 - R_WL), blk(B1, 8), blk(B2, 8), blk(B3, 8), blk(BL, 8)],
        axis=0)
    assert packed.shape == (ROWS, PCOLS)
    return packed


@jax.jit
def conv_base_forward(x, params):
    B = x.shape[0]
    assert x.shape[1] == SEQ

    packed = _build_packed_params(params)

    # layout plumbing only: conv1 zero-padding + 8-aligned lane/batch padding
    B_pad = ((B + BB - 1) // BB) * BB
    x_pad = jnp.pad(x.astype(jnp.float32),
                    ((0, B_pad - B), (P1, XCOLS - SEQ - P1)))     # (B_pad, XCOLS)

    nblk = B_pad // BB
    out = pl.pallas_call(
        convbase_kernel,
        out_shape=jax.ShapeDtypeStruct((B_pad, NPAD), jnp.float32),
        grid=(nblk,),
        in_specs=[
            pl.BlockSpec((BB, XCOLS), lambda i: (i, 0)),          # batch tile
            pl.BlockSpec((ROWS, PCOLS), lambda i: (0, 0)),        # params: resident
        ],
        out_specs=pl.BlockSpec((BB, NPAD), lambda i: (i, 0)),     # (8,128) lane-dense
        compiler_params=pltpu.CompilerParams(
            dimension_semantics=("parallel",)),                   # v7x: 2 TCs split batch
    )(x_pad, packed)

    return out[:B, :OUT_SIZE]


def conv_base_reference(x, params):
    """Pure-JAX reference mirroring torch NCL semantics."""
    (w1, b1, w2, b2, w3, b3, wl, bl) = params
    h = x[:, None, :]                                             # x.view(-1, 1, L)

    def conv1d(h, w, b, stride, pad):
        y = lax.conv_general_dilated(h, w, window_strides=(stride,),
                                     padding=[(pad, pad)],
                                     dimension_numbers=('NCH', 'OIH', 'NCH'))
        return jnp.maximum(y + b[None, :, None], 0.0)

    h1 = conv1d(h, w1, b1, S1, P1)
    h2 = conv1d(h1, w2, b2, S2, P2)
    h3 = conv1d(h2, w3, b3, S3, P3)
    h3f = h3.reshape(h3.shape[0], -1)                             # C-major flatten
    return h3f @ wl.T + bl[None, :]


if __name__ == "__main__":
    key = jax.random.PRNGKey(0)
    ks = jax.random.split(key, 9)
    s = 0.1
    w1 = s * jax.random.normal(ks[0], (CHANNELS, 1, K1), jnp.float32)
    b1 = s * jax.random.normal(ks[1], (CHANNELS,), jnp.float32)
    w2 = s * jax.random.normal(ks[2], (CHANNELS, CHANNELS, K2), jnp.float32)
    b2 = s * jax.random.normal(ks[3], (CHANNELS,), jnp.float32)
    w3 = s * jax.random.normal(ks[4], (CHANNELS, CHANNELS, K3), jnp.float32)
    b3 = s * jax.random.normal(ks[5], (CHANNELS,), jnp.float32)
    wl = s * jax.random.normal(ks[6], (OUT_SIZE, LINEAR_IN * CHANNELS), jnp.float32)
    bl = s * jax.random.normal(ks[7], (OUT_SIZE,), jnp.float32)
    x = jax.random.normal(ks[8], (BATCH, SEQ), jnp.float32)
    params = (w1, b1, w2, b2, w3, b3, wl, bl)

    out = jax.block_until_ready(conv_base_forward(x, params))
    ref = conv_base_reference(x, params)

    assert out.shape == (BATCH, OUT_SIZE)
    assert jnp.allclose(out, ref, atol=1e-4, rtol=1e-4), (
        f"max abs err {float(jnp.max(jnp.abs(out - ref)))}")
    print("KERNEL_OK")
</pallas_src>

<mosaic_0001>
module attributes {stable_mosaic.version = 11 : i64} {
  func.func @convbase_kernel(%arg0: i32, %arg1: memref<8x48xf32, #tpu.memory_space<vmem>>, %arg2: memref<400x160xf32, #tpu.memory_space<vmem>>, %arg3: memref<8x128xf32, #tpu.memory_space<vmem>>) attributes {dimension_semantics = [#tpu.dimension_semantics<parallel>], iteration_bounds = array<i64: 1>, scalar_prefetch = 0 : i64, scratch_operands = 0 : i64, tpu.core_type = #tpu.core_type<tc>, window_params = [{transform_indices = @transform_0, window_bounds = array<i64: 8, 48>}, {pipeline_mode = #tpu.pipeline_mode<synchronous>, transform_indices = @transform_1, window_bounds = array<i64: 400, 160>}, {transform_indices = @transform_2, window_bounds = array<i64: 8, 128>}]} {
    %c0 = arith.constant 0 : index
    %c0_0 = arith.constant 0 : index
    %0 = vector.load %arg1[%c0, %c0_0] : memref<8x48xf32, #tpu.memory_space<vmem>>, vector<8x48xf32>
    %c0_1 = arith.constant 0 : index
    %c0_2 = arith.constant 0 : index
    %1 = vector.load %arg2[%c0_1, %c0_2] : memref<400x160xf32, #tpu.memory_space<vmem>>, vector<48x160xf32>
    %c48 = arith.constant 48 : index
    %c0_3 = arith.constant 0 : index
    %2 = vector.load %arg2[%c48, %c0_3] : memref<400x160xf32, #tpu.memory_space<vmem>>, vector<160x80xf32>
    %c208 = arith.constant 208 : index
    %c0_4 = arith.constant 0 : index
    %3 = vector.load %arg2[%c208, %c0_4] : memref<400x160xf32, #tpu.memory_space<vmem>>, vector<80x80xf32>
    %c288 = arith.constant 288 : index
    %c0_5 = arith.constant 0 : index
    %4 = vector.load %arg2[%c288, %c0_5] : memref<400x160xf32, #tpu.memory_space<vmem>>, vector<80x128xf32>
    %c368 = arith.constant 368 : index
    %c0_6 = arith.constant 0 : index
    %5 = vector.load %arg2[%c368, %c0_6] : memref<400x160xf32, #tpu.memory_space<vmem>>, vector<1x160xf32>
    %c376 = arith.constant 376 : index
    %c0_7 = arith.constant 0 : index
    %6 = vector.load %arg2[%c376, %c0_7] : memref<400x160xf32, #tpu.memory_space<vmem>>, vector<1x80xf32>
    %c384 = arith.constant 384 : index
    %c0_8 = arith.constant 0 : index
    %7 = vector.load %arg2[%c384, %c0_8] : memref<400x160xf32, #tpu.memory_space<vmem>>, vector<1x80xf32>
    %c392 = arith.constant 392 : index
    %c0_9 = arith.constant 0 : index
    %8 = vector.load %arg2[%c392, %c0_9] : memref<400x160xf32, #tpu.memory_space<vmem>>, vector<1x128xf32>
    %cst = arith.constant dense<0.000000e+00> : vector<8x160xf32>
    %9 = tpu.matmul %0, %1, %cst {dimension_numbers = #tpu.dot_dimension_numbers<[1], [0], [0], [1], [0, 0, 1, 1], [], []>} : vector<8x48xf32>, vector<48x160xf32>, vector<8x160xf32> -> vector<8x160xf32>
    %10 = vector.broadcast %5 : vector<1x160xf32> to vector<8x160xf32>
    %11 = arith.addf %9, %10 : vector<8x160xf32>
    %cst_10 = arith.constant 0.000000e+00 : f32
    %12 = vector.broadcast %cst_10 : f32 to vector<8x160xf32>
    %13 = arith.maximumf %11, %12 : vector<8x160xf32>
    %cst_11 = arith.constant dense<0.000000e+00> : vector<8x80xf32>
    %14 = tpu.matmul %13, %2, %cst_11 {dimension_numbers = #tpu.dot_dimension_numbers<[1], [0], [0], [1], [0, 0, 1, 1], [], []>} : vector<8x160xf32>, vector<160x80xf32>, vector<8x80xf32> -> vector<8x80xf32>
    %15 = vector.broadcast %6 : vector<1x80xf32> to vector<8x80xf32>
    %16 = arith.addf %14, %15 : vector<8x80xf32>
    %cst_12 = arith.constant 0.000000e+00 : f32
    %17 = vector.broadcast %cst_12 : f32 to vector<8x80xf32>
    %18 = arith.maximumf %16, %17 : vector<8x80xf32>
    %cst_13 = arith.constant dense<0.000000e+00> : vector<8x80xf32>
    %19 = tpu.matmul %18, %3, %cst_13 {dimension_numbers = #tpu.dot_dimension_numbers<[1], [0], [0], [1], [0, 0, 1, 1], [], []>} : vector<8x80xf32>, vector<80x80xf32>, vector<8x80xf32> -> vector<8x80xf32>
    %20 = vector.broadcast %7 : vector<1x80xf32> to vector<8x80xf32>
    %21 = arith.addf %19, %20 : vector<8x80xf32>
    %cst_14 = arith.constant 0.000000e+00 : f32
    %22 = vector.broadcast %cst_14 : f32 to vector<8x80xf32>
    %23 = arith.maximumf %21, %22 : vector<8x80xf32>
    %cst_15 = arith.constant dense<0.000000e+00> : vector<8x128xf32>
    %24 = tpu.matmul %23, %4, %cst_15 {dimension_numbers = #tpu.dot_dimension_numbers<[1], [0], [0], [1], [0, 0, 1, 1], [], []>} : vector<8x80xf32>, vector<80x128xf32>, vector<8x128xf32> -> vector<8x128xf32>
    %25 = vector.broadcast %8 : vector<1x128xf32> to vector<8x128xf32>
    %26 = arith.addf %24, %25 : vector<8x128xf32>
    %c0_16 = arith.constant 0 : index
    %c0_17 = arith.constant 0 : index
    %27 = vector.load %arg3[%c0_16, %c0_17] : memref<8x128xf32, #tpu.memory_space<vmem>>, vector<8x128xf32>
    tpu.vector_store %arg3[%c0_16, %c0_17], %26 {strides = array<i32>} : memref<8x128xf32, #tpu.memory_space<vmem>>, vector<8x128xf32>,
    return
  }
  func.func @transform_0(%arg0: i32) -> (i32, i32) {
    %c0_i32 = arith.constant 0 : i32
    %c0_i32_0 = arith.constant 0 : i32
    return %arg0, %c0_i32 : i32, i32
  }
  func.func @transform_1(%arg0: i32) -> (i32, i32) {
    %c0_i32 = arith.constant 0 : i32
    %c0_i32_0 = arith.constant 0 : i32
    %c0_i32_1 = arith.constant 0 : i32
    return %c0_i32, %c0_i32_0 : i32, i32
  }
  func.func @transform_2(%arg0: i32) -> (i32, i32) {
    %c0_i32 = arith.constant 0 : i32
    %c0_i32_0 = arith.constant 0 : i32
    return %arg0, %c0_i32 : i32, i32
  }
}

</mosaic_0001>

<bundles_post_ra>
// kernel: tile.18
= control target key start
LH: loop header
LB: loop body
LE: loop exit
PB: predicated region body
PF: predicated region fallthrough
CT: control target
= control target key end

     0   :  { %s34_s0 = inlined_call_operand.vmem [shape: f32[8], index: 0, kind: input, shape index: {}]   ;;  %s35_s1 = inlined_call_operand.vmem [shape: f32[20,8], index: 1, kind: output, shape index: {}]  }
   0x1   :  { %v4_v0 = vld [vmem:[%s34_s0] ss:$0 sm:$0xff] }
   0x2   :  { %5 = vst [vmem:[%s35_s1] sm:$0xff] %v4_v0  ;;  %10 = vst [vmem:[%s35_s1 + $0x8] sm:$0xff] %v4_v0 }
   0x3   :  { %11 = vst [vmem:[%s35_s1 + $0x10] sm:$0xff] %v4_v0 }

// kernel: tile.19
= control target key start
LH: loop header
LB: loop body
LE: loop exit
PB: predicated region body
PF: predicated region fallthrough
CT: control target
= control target key end

     0   :  { %s141_s10 = smov 120   ;;  %s142_s11 = smov 104   ;;  %vm4_vm0 = vcmask 64512   ;;  %vm10_vm1 = vcmask 1048512   ;;  %vm16_vm2 = vcmask 982912   ;;  %vm22_vm3 = vcmask 917312   ;;  %s220_s0 = inlined_call_operand.vmem [shape: f32[20,8], index: 0, kind: input, shape index: {}]   ;;  %s221_s1 = inlined_call_operand.vmem [shape: f32[1,160], index: 1, kind: output, shape index: {}]  }
   0x1   :  { %v110_v0 = vld [vmem:[%s220_s0 + $0xf] sm:$0x1]   ;;  %v112_v1 = vld [vmem:[%s220_s0 + $0xd] sm:$0x1]   ;;  %v111_v2 = vld [vmem:[%s220_s0 + $0xe] sm:$0x1]  }
   0x2   :  { %8 = vrot.lane.b32.xlu0 %v110_v0, %s141_s10  ;;  %20 = vrot.lane.b32.xlu1 %v112_v1, %s142_s11  ;;  %v113_v3 = vld [vmem:[%s220_s0 + $0xc] sm:$0x1]   ;;  %s143_s16 = smov 112   ;;  %s144_s17 = smov 96   ;;  %v114_v4 = vld [vmem:[%s220_s0 + $0xb] sm:$0x1]  }
   0x3   :  { %v115_v5 = vld [vmem:[%s220_s0 + $0xa] sm:$0x1]   ;;  %s145_s22 = smov 88   ;;  %s146_s23 = smov 80   ;;  %v116_v6 = vld [vmem:[%s220_s0 + $0x9] sm:$0x1]  }
   0x4   :  { %s2_s26 = smov 3  ;;  %v117_v7 = vld [vmem:[%s220_s0 + $0x8] sm:$0x1]   ;;  %s147_s2 = smov 72   ;;  %v118_v9 = vld [vmem:[%s220_s0 + $0x7] sm:$0x1]  }
   0x5   :  { %v3_v8 = vld [vmem:[%s220_s0] ss:$16 sm:%s2_s26]   ;;  %s148_s3 = smov 64   ;;  %v119_v10 = vld [vmem:[%s220_s0 + $0x6] sm:$0x1]   ;;  %s149_s8 = smov 56  }
   0x6   :  { %14 = vrot.lane.b32.xlu0 %v111_v2, %s143_s16  ;;  %26 = vrot.lane.b32.xlu1 %v113_v3, %s144_s17  ;;  %5 = vst.msk [vmem:[#allocation0] ss:$8 sm:$0x3] %vm4_vm0, %v3_v8   ;;  %s150_s9 = smov 48   ;;  %v120_v11 = vld [vmem:[%s220_s0 + $0x5] sm:$0x1]  }
   0x7   :  { %v121_v12 = vld [vmem:[%s220_s0 + $0x4] sm:$0x1]   ;;  %s79_s14 = smov 3  ;;  %s86_s15 = smov 3  ;;  %vm28_vm4 = vcmask 851712   ;;  %vm34_vm5 = vcmask 786112  }
   0x8   :  { %s151_s16 = smov 40   ;;  %s152_s17 = smov 32   ;;  %v122_v13 = vld [vmem:[%s220_s0 + $0x3] ss:$16 sm:%s79_s14]   ;;  %v123_v14 = vld [vmem:[%s220_s0 + $0x2] ss:$16 sm:%s86_s15]  }
   0x9   :  { %s154_s24 = smov 16   ;;  %vm40_vm6 = vcmask 720512   ;;  %vm46_vm7 = vcmask 654912   ;;  %vm52_vm8 = vcmask 589312   ;;  %vm58_vm9 = vcmask 523712  }
   0xa   :  { %32 = vrot.lane.b32.xlu0 %v114_v4, %s145_s22  ;;  %38 = vrot.lane.b32.xlu1 %v115_v5, %s146_s23  ;;  %s93_s22 = smov 3  ;;  %s153_s23 = smov 24   ;;  %vm64_vm10 = vcmask 458112   ;;  %vm70_vm11 = vcmask 392512   ;;  %vm76_vm12 = vcmask 326912   ;;  %vm83_vm13 = vcmask 261312  }
   0xb   :  { %v124_v15 = vld [vmem:[%s220_s0 + $0x1] ss:$16 sm:%s93_s22]   ;;  %s155_s0 = smov 8   ;;  %vm90_vm14 = vcmask 195712   ;;  %vm97_vm15 = vcmask 130112  }
   0xe   :  { %44 = vrot.lane.b32.xlu0 %v116_v6, %s147_s2  ;;  %50 = vrot.lane.b32.xlu1 %v117_v7, %s148_s3 }
  0x12   :  { %56 = vrot.lane.b32.xlu0 %v118_v9, %s149_s8  ;;  %62 = vrot.lane.b32.xlu1 %v119_v10, %s150_s9 }
  0x16   :  { %68 = vrot.lane.b32.xlu0 %v120_v11, %s151_s16  ;;  %74 = vrot.lane.b32.xlu1 %v121_v12, %s152_s17 }
  0x1a   :  { %81 = vrot.lane.b32.xlu0 %v122_v13, %s153_s23  ;;  %88 = vrot.lane.b32.xlu1 %v123_v14, %s154_s24 }
  0x1e   :  { %95 = vrot.lane.b32.xlu0 %v124_v15, %s155_s0 }
  0x74   :  { %v9_v16 = vpop.permute.xlu0 %8   ;;  %v21_v17 = vpop.permute.xlu1 %20  }
  0x75   :  { %11 = vst.msk [vmem:[#allocation0] sm:$0x1] %vm10_vm1, %v9_v16  }
  0x78   :  { %v15_v18 = vpop.permute.xlu0 %14   ;;  %v27_v19 = vpop.permute.xlu1 %26  }
  0x79   :  { %17 = vst.msk [vmem:[#allocation0] sm:$0x1] %vm16_vm2, %v15_v18  }
  0x7a   :  { %23 = vst.msk [vmem:[#allocation0] sm:$0x1] %vm22_vm3, %v21_v17  }
  0x7b   :  { %29 = vst.msk [vmem:[#allocation0] sm:$0x1] %vm28_vm4, %v27_v19  }
  0x7c   :  { %v33_v20 = vpop.permute.xlu0 %32   ;;  %v39_v21 = vpop.permute.xlu1 %38  }
  0x7d   :  { %35 = vst.msk [vmem:[#allocation0] sm:$0x1] %vm34_vm5, %v33_v20  }
  0x7e   :  { %41 = vst.msk [vmem:[#allocation0] sm:$0x1] %vm40_vm6, %v39_v21  }
  0x80   :  { %v45_v22 = vpop.permute.xlu0 %44   ;;  %v51_v23 = vpop.permute.xlu1 %50  }
  0x81   :  { %47 = vst.msk [vmem:[#allocation0] sm:$0x1] %vm46_vm7, %v45_v22  }
  0x82   :  { %53 = vst.msk [vmem:[#allocation0] sm:$0x1] %vm52_vm8, %v51_v23  }
  0x84   :  { %v57_v24 = vpop.permute.xlu0 %56   ;;  %v63_v25 = vpop.permute.xlu1 %62  }
  0x85   :  { %59 = vst.msk [vmem:[#allocation0] sm:$0x1] %vm58_vm9, %v57_v24  }
  0x86   :  { %65 = vst.msk [vmem:[#allocation0] sm:$0x1] %vm64_vm10, %v63_v25  }
  0x88   :  { %v69_v26 = vpop.permute.xlu0 %68   ;;  %v75_v27 = vpop.permute.xlu1 %74  }
  0x89   :  { %71 = vst.msk [vmem:[#allocation0] sm:$0x1] %vm70_vm11, %v69_v26  }
  0x8a   :  { %77 = vst.msk [vmem:[#allocation0] sm:$0x1] %vm76_vm12, %v75_v27  }
  0x8c   :  { %v82_v28 = vpop.permute.xlu0 %81   ;;  %v89_v29 = vpop.permute.xlu1 %88  }
  0x8d   :  { %84 = vst.msk [vmem:[#allocation0] ss:$8 sm:$0x3] %vm83_vm13, %v82_v28  }
  0x8e   :  { %91 = vst.msk [vmem:[#allocation0] ss:$8 sm:$0x3] %vm90_vm14, %v89_v29  }
  0x90   :  { %v96_v30 = vpop.permute.xlu0 %95  }
  0x91   :  { %98 = vst.msk [vmem:[#allocation0] ss:$8 sm:$0x3] %vm97_vm15, %v96_v30  }
  0x98   :  { %v102_v31 = vld [vmem:[#allocation0] sm:$0x1]  ;;  %v106_v32 = vld [vmem:[#allocation0 + $0x8] sm:$0x1] }
  0x99   :  { %104 = vst [vmem:[%s221_s1] sm:$0x1] %v102_v31  ;;  %125 = vst [vmem:[%s221_s1 + $0x1] sm:$0x1] %v106_v32 }

// kernel: tile.23
= control target key start
LH: loop header
LB: loop body
LE: loop exit
PB: predicated region body
PF: predicated region fallthrough
CT: control target
= control target key end

     0   :  { %s28_s0 = inlined_call_operand.vmem [shape: f32[8], index: 0, kind: input, shape index: {}]   ;;  %s29_s1 = inlined_call_operand.vmem [shape: f32[10,8], index: 1, kind: output, shape index: {}]  }
   0x1   :  { %v4_v0 = vld [vmem:[%s28_s0] ss:$0 sm:$0xff] }
   0x2   :  { %5 = vst [vmem:[%s29_s1] sm:$0xff] %v4_v0  ;;  %8 = vst [vmem:[%s29_s1 + $0x8] sm:$0xff] %v4_v0 }

// kernel: tile.24
= control target key start
LH: loop header
LB: loop body
LE: loop exit
PB: predicated region body
PF: predicated region fallthrough
CT: control target
= control target key end

     0   :  { %s83_s10 = smov 72   ;;  %s84_s11 = smov 56   ;;  %vm3_vm0 = vcmask 64512   ;;  %vm9_vm1 = vcmask 654912   ;;  %vm15_vm2 = vcmask 589312   ;;  %vm21_vm3 = vcmask 523712   ;;  %s135_s0 = inlined_call_operand.vmem [shape: f32[10,8], index: 0, kind: input, shape index: {}]   ;;  %s136_s1 = inlined_call_operand.vmem [shape: f32[1,80], index: 1, kind: output, shape index: {}]  }
   0x1   :  { %v65_v0 = vld [vmem:[%s135_s0 + $0x9] sm:$0x1]   ;;  %v67_v1 = vld [vmem:[%s135_s0 + $0x7] sm:$0x1]   ;;  %v66_v2 = vld [vmem:[%s135_s0 + $0x8] sm:$0x1]  }
   0x2   :  { %7 = vrot.lane.b32.xlu0 %v65_v0, %s83_s10  ;;  %19 = vrot.lane.b32.xlu1 %v67_v1, %s84_s11  ;;  %v68_v3 = vld [vmem:[%s135_s0 + $0x6] sm:$0x1]   ;;  %v2_v4 = vld [vmem:[%s135_s0] sm:$0x1]   ;;  %s85_s18 = smov 64   ;;  %s86_s19 = smov 48  }
   0x3   :  { %v69_v5 = vld [vmem:[%s135_s0 + $0x5] sm:$0x1]   ;;  %v70_v6 = vld [vmem:[%s135_s0 + $0x4] sm:$0x1]   ;;  %4 = vst.msk [vmem:[#allocation0] sm:$0x1] %vm3_vm0, %v2_v4  }
   0x4   :  { %s87_s24 = smov 40   ;;  %s88_s25 = smov 32   ;;  %v71_v7 = vld [vmem:[%s135_s0 + $0x3] sm:$0x1]   ;;  %v72_v8 = vld [vmem:[%s135_s0 + $0x2] sm:$0x1]  }
   0x5   :  { %s89_s30 = smov 24   ;;  %s90_s2 = smov 16   ;;  %v73_v9 = vld [vmem:[%s135_s0 + $0x1] sm:$0x1]   ;;  %vm27_vm4 = vcmask 458112   ;;  %vm33_vm5 = vcmask 392512  }
   0x6   :  { %13 = vrot.lane.b32.xlu0 %v66_v2, %s85_s18  ;;  %25 = vrot.lane.b32.xlu1 %v68_v3, %s86_s19  ;;  %s91_s0 = smov 8   ;;  %vm39_vm6 = vcmask 326912   ;;  %vm45_vm7 = vcmask 261312   ;;  %vm51_vm8 = vcmask 195712   ;;  %vm57_vm9 = vcmask 130112  }
   0xa   :  { %31 = vrot.lane.b32.xlu0 %v69_v5, %s87_s24  ;;  %37 = vrot.lane.b32.xlu1 %v70_v6, %s88_s25 }
   0xe   :  { %43 = vrot.lane.b32.xlu0 %v71_v7, %s89_s30  ;;  %49 = vrot.lane.b32.xlu1 %v72_v8, %s90_s2 }
  0x12   :  { %55 = vrot.lane.b32.xlu0 %v73_v9, %s91_s0 }
  0x74   :  { %v8_v10 = vpop.permute.xlu0 %7   ;;  %v20_v11 = vpop.permute.xlu1 %19  }
  0x75   :  { %10 = vst.msk [vmem:[#allocation0] sm:$0x1] %vm9_vm1, %v8_v10  }
  0x78   :  { %v14_v12 = vpop.permute.xlu0 %13   ;;  %v26_v13 = vpop.permute.xlu1 %25  }
  0x79   :  { %16 = vst.msk [vmem:[#allocation0] sm:$0x1] %vm15_vm2, %v14_v12  }
  0x7a   :  { %22 = vst.msk [vmem:[#allocation0] sm:$0x1] %vm21_vm3, %v20_v11  }
  0x7b   :  { %28 = vst.msk [vmem:[#allocation0] sm:$0x1] %vm27_vm4, %v26_v13  }
  0x7c   :  { %v32_v14 = vpop.permute.xlu0 %31   ;;  %v38_v15 = vpop.permute.xlu1 %37  }
  0x7d   :  { %34 = vst.msk [vmem:[#allocation0] sm:$0x1] %vm33_vm5, %v32_v14  }
  0x7e   :  { %40 = vst.msk [vmem:[#allocation0] sm:$0x1] %vm39_vm6, %v38_v15  }
  0x80   :  { %v44_v16 = vpop.permute.xlu0 %43   ;;  %v50_v17 = vpop.permute.xlu1 %49  }
  0x81   :  { %46 = vst.msk [vmem:[#allocation0] sm:$0x1] %vm45_vm7, %v44_v16  }
  0x82   :  { %52 = vst.msk [vmem:[#allocation0] sm:$0x1] %vm51_vm8, %v50_v17  }
  0x84   :  { %v56_v18 = vpop.permute.xlu0 %55  }
  0x85   :  { %58 = vst.msk [vmem:[#allocation0] sm:$0x1] %vm57_vm9, %v56_v18  }
  0x8c   :  { %v62_v19 = vld [vmem:[#allocation0] sm:$0x1] }
  0x8d   :  { %64 = vst [vmem:[%s136_s1] sm:$0x1] %v62_v19 }

// kernel: conv_base_forward.1
= control target key start
LH: loop header
LB: loop body
LE: loop exit
PB: predicated region body
PF: predicated region fallthrough
CT: control target
= control target key end

     0   :  { %v533_v3 = vmov 0.0   ;;  %v534_v4 = vmov 0.0|0.0   ;;  %vm80_vm0 = vcmask 392192   ;;  %v70_v63 = vlaneseq  ;;  %s752_s1 = inlined_call_operand.vmem [shape: f32[400,160], index: 1, kind: input, shape index: {}]   ;;  %s753_s0 = inlined_call_operand.vmem [shape: f32[8,48], index: 0, kind: input, shape index: {}]   ;;  %s754_s2 = inlined_call_operand.vmem [shape: f32[8,128], index: 2, kind: output, shape index: {}]  }
   0x1   :  { %v13_v0 = vld [vmem:[%s752_s1 + $0x8] sm:$0xff]  ;;  %v15_v1 = vld [vmem:[%s752_s1 + $0x18] sm:$0xff]  ;;  %v12_v2 = vld [vmem:[%s752_s1] sm:$0xff]  ;;  %148 = vmatprep.mubr.f32.mxu0 %v533_v3  ;;  %470 = vmatprep.subr.bf16.mxu1 %v534_v4  ;;  %vm157_vm1 = vcmask 261120   ;;  %vm535_vm2 = vmmov 0   ;;  %vm232_vm3 = vcmask 654336  }
   0x2   :  { %v458_v5 = vpack.c.bf16 %v15_v1, %v13_v0  ;;  %v14_v6 = vld [vmem:[%s752_s1 + $0x10] sm:$0xff]  ;;  %v17_v7 = vld [vmem:[%s752_s1 + $0x28] sm:$0xff]  ;;  %v19_v8 = vld [vmem:[%s752_s1 + $0x38] sm:$0xff]  ;;  %v71_v0 = vshrl.u32 %v70_v63, 7 }
   0x3   :  { %v460_v9 = vpack.c.bf16 %v14_v6, %v12_v2  ;;  %v462_v10 = vpack.c.bf16 %v19_v8, %v17_v7  ;;  %v16_v11 = vld [vmem:[%s752_s1 + $0x20] sm:$0xff]  ;;  %v18_v12 = vld [vmem:[%s752_s1 + $0x30] sm:$0xff]  ;;  %v21_v13 = vld [vmem:[%s752_s1 + $0x48] sm:$0xff] }
   0x4   :  { %459 = vmatprep.subr.bf16.mxu0 %v458_v5  ;;  %v23_v14 = vld [vmem:[%s752_s1 + $0x58] sm:$0xff]  ;;  %v464_v15 = vpack.c.bf16 %v18_v12, %v16_v11  ;;  %v20_v16 = vld [vmem:[%s752_s1 + $0x40] sm:$0xff]  ;;  %v25_v18 = vld [vmem:[%s752_s1 + $0x70] sm:$0xff]  ;;  %v72_v1 = vsub.s32 0, %v71_v0  ;;  %v76_v5 = vsub.s32 1, %v71_v0 }
   0x5   :  { %461 = vmatpush1.bf16.msra.mxu0 %v460_v9  ;;  %v24_v17 = vld [vmem:[%s752_s1 + $0x60] sm:$0xff]  ;;  %v466_v19 = vpack.c.bf16 %v23_v14, %v21_v13  ;;  %v22_v20 = vld [vmem:[%s752_s1 + $0x50] sm:$0xff] }
   0x6   :  { %463 = vmatprep.subr.bf16.mxu0 %v462_v10  ;;  %v471_v21 = vpack.c.bf16 %v25_v18, %v24_v17  ;;  %v26_v22 = vld [vmem:[%s752_s1 + $0x80] sm:$0xff]  ;;  %v27_v23 = vld [vmem:[%s752_s1 + $0x90] sm:$0xff]  ;;  %v468_v25 = vpack.c.bf16 %v22_v20, %v20_v16 }
   0x7   :  { %v474_v24 = vpack.c.bf16 %v27_v23, %v26_v22  ;;  %v28_v26 = vld [vmem:[%s752_s1 + $0xa0] sm:$0xff]  ;;  %v29_v27 = vld [vmem:[%s752_s1 + $0xb0] sm:$0xff] }
   0x8   :  { %472 = vmatpush1.bf16.msra.mxu1 %v471_v21  ;;  %v477_v28 = vpack.c.bf16 %v29_v27, %v28_v26  ;;  %v11_v29 = vld [vmem:[%s753_s0] sm:$0xff]  ;;  %v31_v31 = vld [vmem:[%s752_s1 + $0xd0] sm:$0xff] }
   0x9   :  { %465 = vmatpush1.bf16.msra.mxu0 %v464_v15  ;;  %473 = vmatprep.subr.bf16.mxu1 %v534_v4  ;;  %v30_v30 = vld [vmem:[%s752_s1 + $0xc0] sm:$0xff]  ;;  %v33_v34 = vld [vmem:[%s752_s1 + $0xf0] sm:$0xff] }
   0xa   :  { %467 = vmatprep.subr.bf16.mxu0 %v466_v19  ;;  %v480_v32 = vpack.c.bf16 %v31_v31, %v30_v30  ;;  %v32_v33 = vld [vmem:[%s752_s1 + $0xe0] sm:$0xff]  ;;  %v35_v37 = vld [vmem:[%s752_s1 + $0x110] sm:$0xff] }
   0xb   :  { %v483_v35 = vpack.c.bf16 %v33_v34, %v32_v33  ;;  %v34_v36 = vld [vmem:[%s752_s1 + $0x100] sm:$0xff]  ;;  %v37_v40 = vld [vmem:[%s752_s1 + $0x130] sm:$0xff] }
   0xc   :  { %475 = vmatpush1.bf16.msra.mxu1 %v474_v24  ;;  %v486_v38 = vpack.c.bf16 %v35_v37, %v34_v36  ;;  %v36_v39 = vld [vmem:[%s752_s1 + $0x120] sm:$0xff]  ;;  %v39_v43 = vld [vmem:[%s752_s1 + $0x150] sm:$0xff] }
   0xd   :  { %469 = vmatpush1.bf16.msra.mxu0 %v468_v25  ;;  %476 = vmatprep.subr.bf16.mxu1 %v534_v4  ;;  %v489_v41 = vpack.c.bf16 %v37_v40, %v36_v39  ;;  %v38_v42 = vld [vmem:[%s752_s1 + $0x140] sm:$0xff]  ;;  %v41_v46 = vld [vmem:[%s752_s1 + $0x170] sm:$0xff] }
   0xe   :  { %500 = vmatprep.subr.bf16.mxu0 %v534_v4  ;;  %v492_v44 = vpack.c.bf16 %v39_v43, %v38_v42  ;;  %v40_v45 = vld [vmem:[%s752_s1 + $0x160] sm:$0xff]  ;;  %v43_v49 = vld [vmem:[%s752_s1 + $0x190] sm:$0xff] }
   0xf   :  { %v495_v47 = vpack.c.bf16 %v41_v46, %v40_v45  ;;  %v42_v48 = vld [vmem:[%s752_s1 + $0x180] sm:$0xff]  ;;  %v45_v52 = vld [vmem:[%s752_s1 + $0x1b0] sm:$0xff] }
  0x10   :  { %386 = vmatmul.mubr.msk.f32.vlgmr.msra.gmra.mrb[0].mxu0 %vm80_vm0, %v11_v29  ;;  %478 = vmatpush1.bf16.msra.mxu1 %v477_v28  ;;  %v498_v50 = vpack.c.bf16 %v43_v49, %v42_v48  ;;  %v44_v51 = vld [vmem:[%s752_s1 + $0x1a0] sm:$0xff]  ;;  %v47_v55 = vld [vmem:[%s752_s1 + $0x1d0] sm:$0xff] }
  0x11   :  { %479 = vmatprep.subr.bf16.mxu1 %v534_v4  ;;  %v46_v53 = vld [vmem:[%s752_s1 + $0x1c0] sm:$0xff]  ;;  %v501_v54 = vpack.c.bf16 %v45_v52, %v44_v51  ;;  %v49_v58 = vld [vmem:[%s752_s1 + $0x1f0] sm:$0xff]  ;;  %432 = vmatprep.mubr.msk.f32.mxu0 %vm535_vm2, %v533_v3 }
  0x12   :  { %v504_v56 = vpack.c.bf16 %v47_v55, %v46_v53  ;;  %v48_v57 = vld [vmem:[%s752_s1 + $0x1e0] sm:$0xff]  ;;  %v51_v61 = vld [vmem:[%s752_s1 + $0x210] sm:$0xff] }
  0x13   :  { %502 = vmatpush3.bf16.msra.mxu0 %v501_v54  ;;  %v507_v59 = vpack.c.bf16 %v49_v58, %v48_v57  ;;  %v50_v60 = vld [vmem:[%s752_s1 + $0x200] sm:$0xff]  ;;  %v53_v15 = vld [vmem:[%s752_s1 + $0x230] sm:$0xff] }
  0x14   :  { %481 = vmatpush1.bf16.msra.mxu1 %v480_v32  ;;  %503 = vmatprep.subr.bf16.mxu0 %v534_v4  ;;  %v510_v62 = vpack.c.bf16 %v51_v61, %v50_v60  ;;  %v385_v2 = vld [vmem:[%s752_s1 + $0x2e0] ss:$8 sm:$0x3]  ;;  %v66_v17 = vld [vmem:[%s752_s1 + $0x2f0] ss:$0 sm:$0xff] }
  0x15   :  { %482 = vmatprep.subr.bf16.mxu1 %v534_v4  ;;  %v73_v6 = vrot.slane %v385_v2, %v72_v1  ;;  %v77_v7 = vrot.slane %v385_v2, %v76_v5  ;;  %v52_v14 = vld [vmem:[%s752_s1 + $0x220] sm:$0xff]  ;;  %v55_v19 = vld [vmem:[%s752_s1 + $0x250] sm:$0xff] }
  0x16   :  { %v513_v16 = vpack.c.bf16 %v53_v15, %v52_v14  ;;  %v54_v18 = vld [vmem:[%s752_s1 + $0x240] sm:$0xff]  ;;  %v57_v26 = vld [vmem:[%s752_s1 + $0x270] sm:$0xff] }
  0x17   :  { %505 = vmatpush3.bf16.msra.mxu0 %v504_v56  ;;  %v516_v23 = vpack.c.bf16 %v55_v19, %v54_v18  ;;  %v56_v25 = vld [vmem:[%s752_s1 + $0x260] sm:$0xff]  ;;  %v59_v29 = vld [vmem:[%s752_s1 + $0x290] sm:$0xff] }
  0x18   :  { %484 = vmatpush1.bf16.msra.mxu1 %v483_v35  ;;  %506 = vmatprep.subr.bf16.mxu0 %v534_v4  ;;  %v519_v27 = vpack.c.bf16 %v57_v26, %v56_v25  ;;  %v58_v28 = vld [vmem:[%s752_s1 + $0x280] sm:$0xff]  ;;  %v63_v34 = vld [vmem:[%s752_s1 + $0x2d0] sm:$0xff] }
  0x19   :  { %485 = vmatprep.subr.bf16.mxu1 %v534_v4  ;;  %v522_v30 = vpack.c.bf16 %v59_v29, %v58_v28  ;;  %v60_v31 = vld [vmem:[%s752_s1 + $0x2a0] sm:$0xff] }
  0x1a   :  { %v62_v33 = vld [vmem:[%s752_s1 + $0x2c0] sm:$0xff] }
  0x1b   :  { %508 = vmatpush3.bf16.msra.mxu0 %v507_v59  ;;  %v528_v35 = vpack.c.bf16 %v63_v34, %v62_v33  ;;  %v67_v36 = vld [vmem:[%s752_s1 + $0x300] ss:$0 sm:$0xff] }
  0x1c   :  { %487 = vmatpush1.bf16.msra.mxu1 %v486_v38  ;;  %509 = vmatprep.subr.bf16.mxu0 %v534_v4 }
  0x1d   :  { %488 = vmatprep.subr.bf16.mxu1 %v534_v4 }
  0x1f   :  { %511 = vmatpush3.bf16.msra.mxu0 %v510_v62 }
  0x20   :  { %490 = vmatpush1.bf16.msra.mxu1 %v489_v41  ;;  %512 = vmatprep.subr.bf16.mxu0 %v534_v4 }
  0x21   :  { %491 = vmatprep.subr.bf16.mxu1 %v534_v4 }
  0x23   :  { %514 = vmatpush3.bf16.msra.mxu0 %v513_v16 }
  0x24   :  { %493 = vmatpush1.bf16.msra.mxu1 %v492_v44  ;;  %515 = vmatprep.subr.bf16.mxu0 %v534_v4 }
  0x25   :  { %494 = vmatprep.subr.bf16.mxu1 %v534_v4 }
  0x28   :  { %496 = vmatpush1.bf16.msra.mxu1 %v495_v47 }
  0x29   :  { %497 = vmatprep.subr.bf16.mxu1 %v534_v4 }
  0x2c   :  { %499 = vmatpush1.bf16.msra.mxu1 %v498_v50 }
  0xe3   :  { %v150_v8 = vpop.f32.mrb[0].mxu0 }
  0xe4   :  { %v151_v9 = vadd.f32 %v150_v8, %v73_v6  ;;  %v152_v10 = vpop.f32.mrb[1].mxu0 }
  0xe5   :  { %v153_v11 = vadd.f32 %v152_v10, %v77_v7 }
  0xe6   :  { %v155_v13 = vmax.f32 %v151_v9, 0.0 }
  0xe7   :  { %v156_v12 = vmax.f32 %v153_v11, 0.0 }
  0xe9   :  { %387 = vmatprep.mubr.msk.f32.mxu1 %vm157_vm1, %v156_v12 }
  0xea   :  { %226 = vmatmul.mubr.f32.vlgmr.msra.gmra.mrb[0].mxu1 %v155_v13 }
 0x1bd   :  { %v227_v20 = vpop.f32.mrb[0].mxu1 }
 0x1be   :  { %v228_v21 = vadd.f32 %v227_v20, %v66_v17  ;;  %v229_v22 = vpop.f32.mrb[1].mxu1 }
 0x1c0   :  { %v231_v24 = vmax.f32 %v228_v21, 0.0 }
 0x1c2   :  { %433 = vmatmul.mubr.msk.f32.vlgmr.msra.gmra.mrb[2].mxu0 %vm232_vm3, %v231_v24 }
 0x1c3   :  { %517 = vmatpush3.bf16.msra.mxu0 %v516_v23  ;;  %455 = vmatprep.mubr.msk.f32.mxu0 %vm535_vm2, %v533_v3  ;;  %v61_v3 = vld [vmem:[%s752_s1 + $0x2b0] sm:$0xff] }
 0x1c4   :  { %518 = vmatprep.subr.bf16.mxu0 %v534_v4  ;;  %v525_v32 = vpack.c.bf16 %v61_v3, %v60_v31 }
 0x1c7   :  { %520 = vmatpush3.bf16.msra.mxu0 %v519_v27 }
 0x1c8   :  { %521 = vmatprep.subr.bf16.mxu0 %v534_v4 }
 0x1cb   :  { %523 = vmatpush3.bf16.msra.mxu0 %v522_v30 }
 0x1cc   :  { %524 = vmatprep.subr.bf16.mxu0 %v534_v4 }
 0x1cf   :  { %526 = vmatpush3.bf16.msra.mxu0 %v525_v32 }
 0x1d0   :  { %527 = vmatprep.subr.bf16.mxu0 %v534_v4  ;;  %v68_v4 = vld [vmem:[%s752_s1 + $0x310] ss:$0 sm:$0xff] }
 0x1d3   :  { %529 = vmatpush3.bf16.msra.mxu0 %v528_v35 }
 0x295   :  { %v302_v37 = vpop.f32.mrb[2].mxu0 }
 0x296   :  { %v303_v38 = vadd.f32 %v302_v37, %v67_v36  ;;  %v434_v39 = vpop.f32.mrb[3].mxu0 }
 0x298   :  { %v306_v40 = vmax.f32 %v303_v38, 0.0 }
 0x29a   :  { %456 = vmatmul.mubr.msk.f32.vlgmr.msra.gmra.mrb[4].mxu0 %vm232_vm3, %v306_v40 }
 0x36d   :  { %v376_v41 = vpop.f32.mrb[4].mxu0 }
 0x36e   :  { %v377_v42 = vadd.f32 %v376_v41, %v68_v4  ;;  %v457_v43 = vpop.f32.mrb[5].mxu0 }
 0x370   :  { %380 = vst [vmem:[%s754_s2] sm:$0xff] %v377_v42 }

</bundles_post_ra>
